<compile_context>
chip_gen: v7x
topology: tpu7x:2x2x1
jax: 0.10.0
libtpu: 0.0.40
codegen_flags: <defaults>
</compile_context>

<pallas_src>
import jax
import jax.numpy as jnp
from jax import lax
from jax.experimental import pallas as pl
from jax.experimental.pallas import tpu as pltpu


def _leaky_relu(x, slope=0.2):
    return jnp.where(x >= 0, x, slope * x)


def _round_up(x, m):
    return ((x + m - 1) // m) * m


def discriminator_kernel(x_ref, w1_ref, b1_ref, w2_ref, b2_ref, w3_ref, b3_ref,
                         o_ref):
    # x_ref : (TB, F)  f32   -- one batch tile, streamed from HBM
    # w1_ref: (F, H)   bf16   b1_ref: (1, H)   f32
    # w2_ref: (H, H2)  bf16   b2_ref: (1, H2)  f32
    # w3_ref: (1, H2)  bf16   b3_ref: (1,)     f32 scalar in SMEM
    # o_ref : (1, TB)  f32   -- lane-dense output row
    TB = x_ref.shape[0]

    # Layer 1: cast x to bf16 in-register, single bf16 MXU pass, f32 accumulate.
    x = x_ref[...].astype(jnp.bfloat16)                            # (TB, F)
    h1 = jnp.dot(x, w1_ref[...], preferred_element_type=jnp.float32)
    h1 = _leaky_relu(h1 + b1_ref[...])                             # (TB, H) f32
    # Dropout(0.3) == identity in eval mode.

    # Layer 2: same bf16 MXU pattern as layer 1.
    h2 = jnp.dot(h1.astype(jnp.bfloat16), w2_ref[...],
                 preferred_element_type=jnp.float32)
    h2 = _leaky_relu(h2 + b2_ref[...])                             # (TB, H2) f32
    # Dropout(0.3) == identity in eval mode.

    # Layer 3 (H2 -> 1): contract w3 (1,H2) against h2 (TB,H2) along H2 so the
    # result is already lane-dense (1, TB) -- no transpose / masked stores.
    logits = lax.dot_general(
        w3_ref[...], h2.astype(jnp.bfloat16),
        dimension_numbers=(((1,), (1,)), ((), ())),
        preferred_element_type=jnp.float32)                        # (1, TB)
    logits = logits + b3_ref[0]

    # Sigmoid via EUP tanh (no vector divide): sigmoid(z) = 0.5*(1 + tanh(z/2)).
    o_ref[...] = (0.5 * (1.0 + jnp.tanh(0.5 * logits))).astype(o_ref.dtype)


def _vmem_need_bytes(F, H, H2, TB):
    x_tiles = 2 * TB * F * 4                                   # double-buffered f32 x tile
    out_tiles = 2 * TB * 4                                     # double-buffered (1,TB) f32 out
    weights = 2 * ((F * H + H * H2 + H2) * 2 + (H + H2) * 4)   # conservatively double-buffered
    compute = TB * F * 2 + TB * (H + H2) * 8 + TB * 8          # bf16 x copy + activations
    return x_tiles + out_tiles + weights + compute


def _vmem_limit_bytes(F, H, H2, TB):
    need = _vmem_need_bytes(F, H, H2, TB) + (2 << 20)          # Mosaic scratch slack
    # Floor at the 32 MiB default; cap well below v7x's 64 MiB physical VMEM.
    return int(min(max(need, 32 << 20), 48 << 20))


def _pick_batch_tile(B, F, H, H2, batch_tile):
    """Batch-tile selection: big enough to amortize per-step overhead, small
    enough for tiny batches / the v7x 64 MiB VMEM, multiple of 128 when tiled."""
    TB = min(batch_tile, _round_up(B, 16))
    TB = _round_up(TB, 16)                       # bf16 sublane packing
    if TB < B:                                   # >1 tile -> lane-dense out needs TB % 128 == 0
        TB = _round_up(TB, 128)
    if B >= 256 and pl.cdiv(B, TB) < 2:          # v7x megacore: give both TCs a tile
        TB = _round_up((B + 1) // 2, 128)
    while TB > 128 and _vmem_need_bytes(F, H, H2, TB) > (40 << 20):
        TB = _round_up(TB // 2, 128)             # shrink instead of clamping VMEM limit
    return TB


def discriminator_forward(x_nchw, params, *, batch_tile=512):
    """Flatten NCHW input (free reshape) and run the fused MLP kernel."""
    w1, b1, w2, b2, w3, b3 = params
    B = x_nchw.shape[0]
    x2d = x_nchw.reshape(B, -1)                  # row-major, matches torch .view; no copy
    F = x2d.shape[1]
    H = w1.shape[1]
    H2 = w2.shape[1]

    TB = _pick_batch_tile(B, F, H, H2, batch_tile)
    num_tiles = pl.cdiv(B, TB)
    B_pad = num_tiles * TB                       # no input padding: last tile is partial

    # bf16 resident weights (halve VMEM + HBM bytes), f32 biases, scalar b3 in SMEM.
    w1b = w1.astype(jnp.bfloat16)
    w2b = w2.astype(jnp.bfloat16)
    w3b = w3.reshape(1, -1).astype(jnp.bfloat16)          # (1, H2)
    b1f = b1.reshape(1, -1).astype(jnp.float32)           # (1, H)
    b2f = b2.reshape(1, -1).astype(jnp.float32)           # (1, H2)
    b3f = b3.reshape(-1).astype(jnp.float32)              # (1,)

    const = lambda i: (0, 0)                     # weights stay resident across the grid
    in_specs = [
        pl.BlockSpec((TB, F), lambda i: (i, 0)),                  # x tile (f32, streamed)
        pl.BlockSpec((F, H), const),                              # w1
        pl.BlockSpec((1, H), const),                              # b1
        pl.BlockSpec((H, H2), const),                             # w2
        pl.BlockSpec((1, H2), const),                             # b2
        pl.BlockSpec((1, H2), const),                             # w3 row
        pl.BlockSpec(memory_space=pltpu.MemorySpace.SMEM),        # b3 scalar
    ]
    # Lane-dense output: one (1, TB) row per grid step.
    out_spec = pl.BlockSpec((1, TB), lambda i: (0, i))

    flops = 2 * B_pad * (F * H + H * H2 + H2)
    bytes_accessed = (B * F * 4                           # x read once, f32
                      + (F * H + H * H2 + H2) * 2         # bf16 weights
                      + (H + H2 + 1) * 4                  # biases
                      + B_pad * 4)                        # output
    cost = pl.CostEstimate(flops=int(flops), transcendentals=int(B_pad),
                           bytes_accessed=int(bytes_accessed))

    out = pl.pallas_call(
        discriminator_kernel,
        out_shape=jax.ShapeDtypeStruct((1, B_pad), jnp.float32),
        grid=(num_tiles,),
        in_specs=in_specs,
        out_specs=out_spec,
        compiler_params=pltpu.CompilerParams(
            dimension_semantics=("parallel",),
            vmem_limit_bytes=_vmem_limit_bytes(F, H, H2, TB)),
        cost_estimate=cost,
    )(x2d, w1b, b1f, w2b, b2f, w3b, b3f)

    # Padded rows (ragged last tile) hold garbage; drop them here.
    return out.reshape(-1)[:B].reshape(B, 1)


def init_params(key, input_size, hidden_size):
    """Deterministic parameter init (nn.Linear shapes, stored as (in, out))."""
    k1, k2, k3, k4, k5, k6 = jax.random.split(key, 6)

    def lin(kw, kb, fan_in, fan_out):
        bound = 1.0 / jnp.sqrt(fan_in)
        w = jax.random.uniform(kw, (fan_in, fan_out), jnp.float32, -bound, bound)
        b = jax.random.uniform(kb, (1, fan_out), jnp.float32, -bound, bound)
        return w, b

    w1, b1 = lin(k1, k2, input_size, hidden_size)
    w2, b2 = lin(k3, k4, hidden_size, hidden_size // 2)
    w3, b3 = lin(k5, k6, hidden_size // 2, 1)
    return (w1, b1, w2, b2, w3, b3)


def reference_forward(x_nchw, params):
    """Pure-JAX reference using the same bf16 quantization as the kernel."""
    w1, b1, w2, b2, w3, b3 = params
    B = x_nchw.shape[0]
    x = x_nchw.reshape(B, -1)
    h1 = jnp.dot(x.astype(jnp.bfloat16), w1.astype(jnp.bfloat16),
                 preferred_element_type=jnp.float32) + b1.reshape(1, -1)
    h1 = _leaky_relu(h1)
    h2 = jnp.dot(h1.astype(jnp.bfloat16), w2.astype(jnp.bfloat16),
                 preferred_element_type=jnp.float32) + b2.reshape(1, -1)
    h2 = _leaky_relu(h2)
    logits = jnp.dot(h2.astype(jnp.bfloat16),
                     w3.astype(jnp.bfloat16).reshape(-1, 1),
                     preferred_element_type=jnp.float32) + b3.reshape(1, 1)
    return jax.nn.sigmoid(logits)


if __name__ == "__main__":
    key = jax.random.PRNGKey(0)
    kx, kp = jax.random.split(key)

    # Small shapes: batch=2, channels=4, spatial=16x16 -> input_size=1024
    B, C, Hs, Ws = 2, 4, 16, 16
    input_size = C * Hs * Ws
    hidden_size = 32

    x = jax.random.normal(kx, (B, C, Hs, Ws), jnp.float32)
    params = init_params(kp, input_size, hidden_size)

    out = discriminator_forward(x, params)
    out = jax.block_until_ready(out)

    ref = reference_forward(x, params)
    assert out.shape == (B, 1), out.shape
    assert bool(jnp.all(jnp.isfinite(out))), out
    assert jnp.allclose(out, ref, atol=1e-3, rtol=1e-3), (out, ref)
    print("KERNEL_OK")
</pallas_src>

<mosaic_0001>
module attributes {stable_mosaic.version = 11 : i64} {
  func.func @discriminator_kernel(%arg0: i32, %arg1: memref<16x1024xf32, #tpu.memory_space<vmem>>, %arg2: memref<1024x32xbf16, #tpu.memory_space<vmem>>, %arg3: memref<1x32xf32, #tpu.memory_space<vmem>>, %arg4: memref<32x16xbf16, #tpu.memory_space<vmem>>, %arg5: memref<1x16xf32, #tpu.memory_space<vmem>>, %arg6: memref<1x16xbf16, #tpu.memory_space<vmem>>, %arg7: memref<1xf32, #tpu.memory_space<smem>>, %arg8: memref<1x16xf32, #tpu.memory_space<vmem>>) attributes {dimension_semantics = [#tpu.dimension_semantics<parallel>], iteration_bounds = array<i64: 1>, scalar_prefetch = 0 : i64, scratch_operands = 0 : i64, tpu.core_type = #tpu.core_type<tc>, window_params = [{transform_indices = @transform_0, window_bounds = array<i64: 16, 1024>}, {pipeline_mode = #tpu.pipeline_mode<synchronous>, transform_indices = @transform_1, window_bounds = array<i64: 1024, 32>}, {pipeline_mode = #tpu.pipeline_mode<synchronous>, transform_indices = @transform_2, window_bounds = array<i64: 1, 32>}, {pipeline_mode = #tpu.pipeline_mode<synchronous>, transform_indices = @transform_3, window_bounds = array<i64: 32, 16>}, {pipeline_mode = #tpu.pipeline_mode<synchronous>, transform_indices = @transform_4, window_bounds = array<i64: 1, 16>}, {pipeline_mode = #tpu.pipeline_mode<synchronous>, transform_indices = @transform_5, window_bounds = array<i64: 1, 16>}, {transform_indices = @transform_6, window_bounds = array<i64: 1>}, {transform_indices = @transform_7, window_bounds = array<i64: 1, 16>}]} {
    %c0 = arith.constant 0 : index
    %c0_0 = arith.constant 0 : index
    %0 = vector.load %arg1[%c0, %c0_0] : memref<16x1024xf32, #tpu.memory_space<vmem>>, vector<16x1024xf32>
    %1 = arith.truncf %0 : vector<16x1024xf32> to vector<16x1024xbf16>
    %c0_1 = arith.constant 0 : index
    %c0_2 = arith.constant 0 : index
    %2 = vector.load %arg2[%c0_1, %c0_2] : memref<1024x32xbf16, #tpu.memory_space<vmem>>, vector<1024x32xbf16>
    %cst = arith.constant dense<0.000000e+00> : vector<16x32xf32>
    %3 = tpu.matmul %1, %2, %cst {dimension_numbers = #tpu.dot_dimension_numbers<[1], [0], [0], [1], [0, 0, 1, 1], [], []>} : vector<16x1024xbf16>, vector<1024x32xbf16>, vector<16x32xf32> -> vector<16x32xf32>
    %c0_3 = arith.constant 0 : index
    %c0_4 = arith.constant 0 : index
    %4 = vector.load %arg3[%c0_3, %c0_4] : memref<1x32xf32, #tpu.memory_space<vmem>>, vector<1x32xf32>
    %5 = vector.broadcast %4 : vector<1x32xf32> to vector<16x32xf32>
    %6 = arith.addf %3, %5 : vector<16x32xf32>
    %cst_5 = arith.constant 0.000000e+00 : f32
    %7 = vector.broadcast %cst_5 : f32 to vector<16x32xf32>
    %8 = arith.cmpf oge, %6, %7 : vector<16x32xf32>
    %cst_6 = arith.constant 2.000000e-01 : f32
    %9 = vector.broadcast %cst_6 : f32 to vector<16x32xf32>
    %10 = arith.mulf %9, %6 : vector<16x32xf32>
    %11 = arith.select %8, %6, %10 : vector<16x32xi1>, vector<16x32xf32>
    %12 = arith.truncf %11 : vector<16x32xf32> to vector<16x32xbf16>
    %c0_7 = arith.constant 0 : index
    %c0_8 = arith.constant 0 : index
    %13 = vector.load %arg4[%c0_7, %c0_8] : memref<32x16xbf16, #tpu.memory_space<vmem>>, vector<32x16xbf16>
    %cst_9 = arith.constant dense<0.000000e+00> : vector<16x16xf32>
    %14 = tpu.matmul %12, %13, %cst_9 {dimension_numbers = #tpu.dot_dimension_numbers<[1], [0], [0], [1], [0, 0, 1, 1], [], []>} : vector<16x32xbf16>, vector<32x16xbf16>, vector<16x16xf32> -> vector<16x16xf32>
    %c0_10 = arith.constant 0 : index
    %c0_11 = arith.constant 0 : index
    %15 = vector.load %arg5[%c0_10, %c0_11] : memref<1x16xf32, #tpu.memory_space<vmem>>, vector<1x16xf32>
    %16 = vector.broadcast %15 : vector<1x16xf32> to vector<16x16xf32>
    %17 = arith.addf %14, %16 : vector<16x16xf32>
    %cst_12 = arith.constant 0.000000e+00 : f32
    %18 = vector.broadcast %cst_12 : f32 to vector<16x16xf32>
    %19 = arith.cmpf oge, %17, %18 : vector<16x16xf32>
    %cst_13 = arith.constant 2.000000e-01 : f32
    %20 = vector.broadcast %cst_13 : f32 to vector<16x16xf32>
    %21 = arith.mulf %20, %17 : vector<16x16xf32>
    %22 = arith.select %19, %17, %21 : vector<16x16xi1>, vector<16x16xf32>
    %c0_14 = arith.constant 0 : index
    %c0_15 = arith.constant 0 : index
    %23 = vector.load %arg6[%c0_14, %c0_15] : memref<1x16xbf16, #tpu.memory_space<vmem>>, vector<1x16xbf16>
    %24 = arith.truncf %22 : vector<16x16xf32> to vector<16x16xbf16>
    %cst_16 = arith.constant dense<0.000000e+00> : vector<1x16xf32>
    %25 = tpu.matmul %23, %24, %cst_16 {dimension_numbers = #tpu.dot_dimension_numbers<[1], [1], [0], [0], [0, 0, 1, 0], [], []>} : vector<1x16xbf16>, vector<16x16xbf16>, vector<1x16xf32> -> vector<1x16xf32>
    %c0_17 = arith.constant 0 : index
    %26 = memref.load %arg7[%c0_17] : memref<1xf32, #tpu.memory_space<smem>>
    %27 = vector.broadcast %26 : f32 to vector<1x16xf32>
    %28 = arith.addf %25, %27 : vector<1x16xf32>
    %cst_18 = arith.constant 5.000000e-01 : f32
    %29 = vector.broadcast %cst_18 : f32 to vector<1x16xf32>
    %30 = arith.mulf %29, %28 : vector<1x16xf32>
    %31 = math.tanh %30 : vector<1x16xf32>
    %cst_19 = arith.constant 1.000000e+00 : f32
    %32 = vector.broadcast %cst_19 : f32 to vector<1x16xf32>
    %33 = arith.addf %32, %31 : vector<1x16xf32>
    %cst_20 = arith.constant 5.000000e-01 : f32
    %34 = vector.broadcast %cst_20 : f32 to vector<1x16xf32>
    %35 = arith.mulf %34, %33 : vector<1x16xf32>
    %c0_21 = arith.constant 0 : index
    %c0_22 = arith.constant 0 : index
    %36 = vector.load %arg8[%c0_21, %c0_22] : memref<1x16xf32, #tpu.memory_space<vmem>>, vector<1x16xf32>
    tpu.vector_store %arg8[%c0_21, %c0_22], %35 {strides = array<i32>} : memref<1x16xf32, #tpu.memory_space<vmem>>, vector<1x16xf32>,
    return
  }
  func.func @transform_0(%arg0: i32) -> (i32, i32) {
    %c0_i32 = arith.constant 0 : i32
    %c0_i32_0 = arith.constant 0 : i32
    return %arg0, %c0_i32 : i32, i32
  }
  func.func @transform_1(%arg0: i32) -> (i32, i32) {
    %c0_i32 = arith.constant 0 : i32
    %c0_i32_0 = arith.constant 0 : i32
    %c0_i32_1 = arith.constant 0 : i32
    return %c0_i32, %c0_i32_0 : i32, i32
  }
  func.func @transform_2(%arg0: i32) -> (i32, i32) {
    %c0_i32 = arith.constant 0 : i32
    %c0_i32_0 = arith.constant 0 : i32
    %c0_i32_1 = arith.constant 0 : i32
    return %c0_i32, %c0_i32_0 : i32, i32
  }
  func.func @transform_3(%arg0: i32) -> (i32, i32) {
    %c0_i32 = arith.constant 0 : i32
    %c0_i32_0 = arith.constant 0 : i32
    %c0_i32_1 = arith.constant 0 : i32
    return %c0_i32, %c0_i32_0 : i32, i32
  }
  func.func @transform_4(%arg0: i32) -> (i32, i32) {
    %c0_i32 = arith.constant 0 : i32
    %c0_i32_0 = arith.constant 0 : i32
    %c0_i32_1 = arith.constant 0 : i32
    return %c0_i32, %c0_i32_0 : i32, i32
  }
  func.func @transform_5(%arg0: i32) -> (i32, i32) {
    %c0_i32 = arith.constant 0 : i32
    %c0_i32_0 = arith.constant 0 : i32
    %c0_i32_1 = arith.constant 0 : i32
    return %c0_i32, %c0_i32_0 : i32, i32
  }
  func.func @transform_6(%arg0: i32) -> i32 {
    %c0_i32 = arith.constant 0 : i32
    %c0_i32_0 = arith.constant 0 : i32
    return %c0_i32 : i32
  }
  func.func @transform_7(%arg0: i32) -> (i32, i32) {
    %c0_i32 = arith.constant 0 : i32
    %c0_i32_0 = arith.constant 0 : i32
    return %c0_i32, %arg0 : i32, i32
  }
}

</mosaic_0001>

<bundles_post_ra>
// kernel: tpu_custom_call.1
= control target key start
LH: loop header
LB: loop body
LE: loop exit
PB: predicated region body
PF: predicated region fallthrough
CT: control target
= control target key end

     0   :  { %v68_v30 = vlaneseq  ;;  %v1361_v33 = vmov 1983009808   ;;  %s1693_s0 = inlined_call_operand.vmem [shape: f32[2,1024], index: 0, kind: input, shape index: {}]   ;;  %s1694_s1 = inlined_call_operand.vmem [shape: bf16[1024,32], index: 1, kind: input, shape index: {}]   ;;  %s1695_s2 = inlined_call_operand.vmem [shape: f32[1,32], index: 2, kind: input, shape index: {}]   ;;  %s1696_s3 = inlined_call_operand.vmem [shape: bf16[32,16], index: 3, kind: input, shape index: {}]   ;;  %s1697_s4 = inlined_call_operand.vmem [shape: f32[1,16], index: 4, kind: input, shape index: {}]   ;;  %s1698_s5 = inlined_call_operand.vmem [shape: bf16[1,16], index: 5, kind: input, shape index: {}]   ;;  %s1699_s6 = inlined_call_operand.<no memory space> [shape: f32[1], index: 6, kind: input, shape index: {}]   ;;  %s1700_s7 = inlined_call_operand.hbm [shape: f32[1,16], index: 7, kind: output, shape index: {}]  }
   0x1   :  { %v1245_v0 = vld [vmem:[%s1694_s1 + $0x40] sm:$0xff]   ;;  %v1249_v4 = vld [vmem:[%s1694_s1 + $0x48] sm:$0xff]   ;;  %v1253_v8 = vld [vmem:[%s1694_s1 + $0x50] sm:$0xff]   ;;  %v66_v34 = vunpack.c.l.s4 %v1361_v33 }
   0x2   :  { %v1246_v1 = vld [vmem:[%s1694_s1 + $0xc0] sm:$0xff]   ;;  %1134 = vmatprep.subr.bf16.mxu0 %v1245_v0  ;;  %v1250_v5 = vld [vmem:[%s1694_s1 + $0xc8] sm:$0xff]   ;;  %v1254_v9 = vld [vmem:[%s1694_s1 + $0xd0] sm:$0xff]   ;;  %v69_v35 = vshrl.u32 %v68_v30, 7 }
   0x3   :  { %v1247_v2 = vld [vmem:[%s1694_s1] sm:$0xff]   ;;  %1156 = vmatprep.subr.bf16.mxu1 %v1246_v1  ;;  %v1251_v6 = vld [vmem:[%s1694_s1 + $0x8] sm:$0xff]   ;;  %v1255_v10 = vld [vmem:[%s1694_s1 + $0x10] sm:$0xff]   ;;  %v67_v38 = vunpack.c.0.s8 %v66_v34 }
   0x4   :  { %v1248_v3 = vld [vmem:[%s1694_s1 + $0x80] sm:$0xff]   ;;  %1135 = vmatpush3.bf16.msra.mxu0 %v1247_v2  ;;  %v1252_v7 = vld [vmem:[%s1694_s1 + $0x88] sm:$0xff]   ;;  %v1256_v11 = vld [vmem:[%s1694_s1 + $0x90] sm:$0xff]  }
   0x5   :  { %1157 = vmatpush3.bf16.msra.mxu1 %v1248_v3  ;;  %1136 = vmatprep.subr.bf16.mxu0 %v1249_v4  ;;  %v1257_v12 = vld [vmem:[%s1694_s1 + $0x58] sm:$0xff]   ;;  %v1261_v16 = vld [vmem:[%s1694_s1 + $0x60] sm:$0xff]   ;;  %v1265_v20 = vld [vmem:[%s1694_s1 + $0x68] sm:$0xff]   ;;  %v1522_v44 = vsub.s32 %v67_v38, %v69_v35 }
   0x6   :  { %1158 = vmatprep.subr.bf16.mxu1 %v1250_v5  ;;  %v1258_v13 = vld [vmem:[%s1694_s1 + $0xd8] sm:$0xff]   ;;  %v1262_v17 = vld [vmem:[%s1694_s1 + $0xe0] sm:$0xff]   ;;  %v1266_v21 = vld [vmem:[%s1694_s1 + $0xe8] sm:$0xff]  }
   0x7   :  { %v1259_v14 = vld [vmem:[%s1694_s1 + $0x18] sm:$0xff]   ;;  %v1263_v18 = vld [vmem:[%s1694_s1 + $0x20] sm:$0xff]   ;;  %v1267_v22 = vld [vmem:[%s1694_s1 + $0x28] sm:$0xff]  }
   0x8   :  { %1137 = vmatpush3.bf16.msra.mxu0 %v1251_v6  ;;  %v1260_v15 = vld [vmem:[%s1694_s1 + $0x98] sm:$0xff]   ;;  %v1264_v19 = vld [vmem:[%s1694_s1 + $0xa0] sm:$0xff]   ;;  %v1268_v23 = vld [vmem:[%s1694_s1 + $0xa8] sm:$0xff]  }
   0x9   :  { %1159 = vmatpush3.bf16.msra.mxu1 %v1252_v7  ;;  %1138 = vmatprep.subr.bf16.mxu0 %v1253_v8  ;;  %v1269_v24 = vld [vmem:[%s1694_s1 + $0x70] sm:$0xff]   ;;  %v1273_v28 = vld [vmem:[%s1694_s1 + $0x78] sm:$0xff]   ;;  %v1289_v46 = vld [vmem:[%s1694_s1 + $0x140] sm:$0xff]  }
   0xa   :  { %1160 = vmatprep.subr.bf16.mxu1 %v1254_v9  ;;  %v1270_v25 = vld [vmem:[%s1694_s1 + $0xf0] sm:$0xff]   ;;  %v1274_v29 = vld [vmem:[%s1694_s1 + $0xf8] sm:$0xff]   ;;  %v1290_v51 = vld [vmem:[%s1694_s1 + $0x1c0] sm:$0xff]  }
   0xb   :  { %v1271_v26 = vld [vmem:[%s1694_s1 + $0x30] sm:$0xff]   ;;  %v1275_v31 = vld [vmem:[%s1694_s1 + $0x38] sm:$0xff]   ;;  %v1291_v60 = vld [vmem:[%s1694_s1 + $0x100] sm:$0xff]  }
   0xc   :  { %1139 = vmatpush3.bf16.msra.mxu0 %v1255_v10  ;;  %v1272_v27 = vld [vmem:[%s1694_s1 + $0xb0] sm:$0xff]   ;;  %v1276_v32 = vld [vmem:[%s1694_s1 + $0xb8] sm:$0xff]   ;;  %v1292_v1 = vld [vmem:[%s1694_s1 + $0x180] sm:$0xff]  }
   0xd   :  { %1161 = vmatpush3.bf16.msra.mxu1 %v1256_v11  ;;  %1140 = vmatprep.subr.bf16.mxu0 %v1257_v12  ;;  %v1277_v36 = vld [vmem:[%s1693_s0] ss:$16 sps:$4 sm:$0xff]   ;;  %v1285_v41 = vld [vmem:[%s1693_s0 + $0x4] ss:$16 sps:$4 sm:$0xff]   ;;  %v1293_v4 = vld [vmem:[%s1694_s1 + $0x148] sm:$0xff]  }
   0xe   :  { %1162 = vmatprep.subr.bf16.mxu1 %v1258_v13  ;;  %v1279_v37 = vld [vmem:[%s1693_s0 + $0x20] ss:$16 sps:$4 sm:$0xff]   ;;  %v1286_v42 = vld [vmem:[%s1693_s0 + $0x24] ss:$16 sps:$4 sm:$0xff]   ;;  %v71_v47 = vrot.slane %v1277_v36, %v1522_v44  ;;  %v78_v52 = vrot.slane %v1285_v41, %v1522_v44  ;;  %v1294_v7 = vld [vmem:[%s1694_s1 + $0x1c8] sm:$0xff]  }
   0xf   :  { %v1281_v39 = vld [vmem:[%s1693_s0 + $0x40] ss:$16 sps:$4 sm:$0xff]   ;;  %v1287_v43 = vld [vmem:[%s1693_s0 + $0x44] ss:$16 sps:$4 sm:$0xff]   ;;  %v85_v48 = vrot.slane %v1279_v37, %v1522_v44  ;;  %v92_v53 = vrot.slane %v1286_v42, %v1522_v44  ;;  %v1295_v8 = vld [vmem:[%s1694_s1 + $0x108] sm:$0xff]  }
  0x10   :  { %1141 = vmatpush3.bf16.msra.mxu0 %v1259_v14  ;;  %v1283_v40 = vld [vmem:[%s1693_s0 + $0x60] ss:$16 sps:$4 sm:$0xff]   ;;  %v1288_v45 = vld [vmem:[%s1693_s0 + $0x64] ss:$16 sps:$4 sm:$0xff]   ;;  %v143_v49 = vrot.slane %v1281_v39, %v1522_v44  ;;  %v150_v54 = vrot.slane %v1287_v43, %v1522_v44  ;;  %v1296_v9 = vld [vmem:[%s1694_s1 + $0x188] sm:$0xff]  }
  0x11   :  { %1163 = vmatpush3.bf16.msra.mxu1 %v1260_v15  ;;  %1142 = vmatprep.subr.bf16.mxu0 %v1261_v16  ;;  %v157_v50 = vrot.slane %v1283_v40, %v1522_v44  ;;  %v164_v55 = vrot.slane %v1288_v45, %v1522_v44  ;;  %v94_v56 = vcombine.high %v71_v47, %v85_v48  ;;  %v1297_v10 = vld [vmem:[%s1694_s1 + $0x150] sm:$0xff]   ;;  %v1301_v14 = vld [vmem:[%s1694_s1 + $0x158] sm:$0xff]  }
  0x12   :  { %1164 = vmatprep.subr.bf16.mxu1 %v1262_v17  ;;  %v93_v58 = vcombine.low %v71_v47, %v85_v48  ;;  %v96_v61 = vcombine.high %v78_v52, %v92_v53  ;;  %v95_v63 = vcombine.low %v78_v52, %v92_v53  ;;  %v1298_v11 = vld [vmem:[%s1694_s1 + $0x1d0] sm:$0xff]   ;;  %v1302_v15 = vld [vmem:[%s1694_s1 + $0x1d8] sm:$0xff]  }
  0x13   :  { %v166_v57 = vcombine.high %v143_v49, %v157_v50  ;;  %v165_v59 = vcombine.low %v143_v49, %v157_v50  ;;  %v168_v62 = vcombine.high %v150_v54, %v164_v55  ;;  %v167_v0 = vcombine.low %v150_v54, %v164_v55  ;;  %v1299_v12 = vld [vmem:[%s1694_s1 + $0x110] sm:$0xff]   ;;  %v1303_v16 = vld [vmem:[%s1694_s1 + $0x118] sm:$0xff]  }
  0x14   :  { %1143 = vmatpush3.bf16.msra.mxu0 %v1263_v18  ;;  %v1300_v13 = vld [vmem:[%s1694_s1 + $0x190] sm:$0xff]   ;;  %v1304_v17 = vld [vmem:[%s1694_s1 + $0x198] sm:$0xff]   ;;  %v1305_v18 = vld [vmem:[%s1694_s1 + $0x160] sm:$0xff]  }
  0x15   :  { %1165 = vmatpush3.bf16.msra.mxu1 %v1264_v19  ;;  %1144 = vmatprep.subr.bf16.mxu0 %v1265_v20  ;;  %v222_v2 = vpack.c.bf16 %v166_v57, %v94_v56  ;;  %v221_v3 = vpack.c.bf16 %v165_v59, %v93_v58  ;;  %v224_v5 = vpack.c.bf16 %v168_v62, %v96_v61  ;;  %v1306_v19 = vld [vmem:[%s1694_s1 + $0x1e0] sm:$0xff]   ;;  %v1317_v30 = vld [vmem:[%s1694_s1 + $0x178] sm:$0xff]  }
  0x16   :  { %1166 = vmatprep.subr.bf16.mxu1 %v1266_v21  ;;  %v223_v6 = vpack.c.bf16 %v167_v0, %v95_v63  ;;  %v1307_v20 = vld [vmem:[%s1694_s1 + $0x120] sm:$0xff]   ;;  %v1320_v33 = vld [vmem:[%s1694_s1 + $0x1b8] sm:$0xff]  }
  0x17   :  { %780 = vmatprep.mubr.bf16.mxu0 %v222_v2  ;;  %821 = vmatprep.mubr.bf16.mxu1 %v224_v5  ;;  %v1308_v21 = vld [vmem:[%s1694_s1 + $0x1a0] sm:$0xff]   ;;  %v1321_v34 = vld [vmem:[%s1693_s0 + $0x8] ss:$16 sps:$4 sm:$0xff]   ;;  %v1329_v38 = vld [vmem:[%s1693_s0 + $0xc] ss:$16 sps:$4 sm:$0xff]  }
  0x18   :  { %1145 = vmatpush3.bf16.msra.mxu0 %v1267_v22  ;;  %v1309_v22 = vld [vmem:[%s1694_s1 + $0x168] sm:$0xff]   ;;  %v107_v40 = vrot.slane %v1321_v34, %v1522_v44  ;;  %v114_v47 = vrot.slane %v1329_v38, %v1522_v44 }
  0x19   :  { %1167 = vmatpush3.bf16.msra.mxu1 %v1268_v23  ;;  %1146 = vmatprep.subr.bf16.mxu0 %v1269_v24  ;;  %v1310_v23 = vld [vmem:[%s1694_s1 + $0x1e8] sm:$0xff]  }
  0x1a   :  { %1168 = vmatprep.subr.bf16.mxu1 %v1270_v25  ;;  %v1311_v24 = vld [vmem:[%s1694_s1 + $0x128] sm:$0xff]  }
  0x1b   :  { %v1312_v25 = vld [vmem:[%s1694_s1 + $0x1a8] sm:$0xff]  }
  0x1c   :  { %1147 = vmatpush3.bf16.msra.mxu0 %v1271_v26  ;;  %v1313_v26 = vld [vmem:[%s1694_s1 + $0x170] sm:$0xff]   ;;  %v1323_v35 = vld [vmem:[%s1693_s0 + $0x28] ss:$16 sps:$4 sm:$0xff]   ;;  %v1330_v39 = vld [vmem:[%s1693_s0 + $0x2c] ss:$16 sps:$4 sm:$0xff]  }
  0x1d   :  { %1169 = vmatpush3.bf16.msra.mxu1 %v1272_v27  ;;  %1148 = vmatprep.subr.bf16.mxu0 %v1273_v28  ;;  %v1314_v27 = vld [vmem:[%s1694_s1 + $0x1f0] sm:$0xff]   ;;  %v1325_v36 = vld [vmem:[%s1693_s0 + $0x48] ss:$16 sps:$4 sm:$0xff]   ;;  %v121_v41 = vrot.slane %v1323_v35, %v1522_v44  ;;  %v1331_v43 = vld [vmem:[%s1693_s0 + $0x4c] ss:$16 sps:$4 sm:$0xff]   ;;  %v128_v48 = vrot.slane %v1330_v39, %v1522_v44 }
  0x1e   :  { %1170 = vmatprep.subr.bf16.mxu1 %v1274_v29  ;;  %v1315_v28 = vld [vmem:[%s1694_s1 + $0x130] sm:$0xff]   ;;  %v1327_v37 = vld [vmem:[%s1693_s0 + $0x68] ss:$16 sps:$4 sm:$0xff]   ;;  %v179_v42 = vrot.slane %v1325_v36, %v1522_v44  ;;  %v1332_v45 = vld [vmem:[%s1693_s0 + $0x6c] ss:$16 sps:$4 sm:$0xff]   ;;  %v186_v50 = vrot.slane %v1331_v43, %v1522_v44 }
  0x1f   :  { %v1316_v29 = vld [vmem:[%s1694_s1 + $0x1b0] sm:$0xff]   ;;  %v130_v49 = vcombine.high %v107_v40, %v121_v41  ;;  %v129_v52 = vcombine.low %v107_v40, %v121_v41 }
  0x20   :  { %1149 = vmatpush3.bf16.msra.mxu0 %v1275_v31  ;;  %v1318_v31 = vld [vmem:[%s1694_s1 + $0x1f8] sm:$0xff]  }
  0x21   :  { %1171 = vmatpush3.bf16.msra.mxu1 %v1276_v32  ;;  %1178 = vmatprep.subr.bf16.mxu0 %v1289_v46  ;;  %v1319_v32 = vld [vmem:[%s1694_s1 + $0x138] sm:$0xff]   ;;  %v193_v46 = vrot.slane %v1327_v37, %v1522_v44 }
  0x22   :  { %1200 = vmatprep.subr.bf16.mxu1 %v1290_v51  ;;  %v200_v51 = vrot.slane %v1332_v45, %v1522_v44 }
  0x23   :  { %781 = vmatmul.mubr.bf16.vlgmr.msra.gmra.mrb[0].mxu0 %v221_v3 }
  0x24   :  { %822 = vmatmul.mubr.bf16.vlgmr.msra.gmra.mrb[0].mxu1 %v223_v6  ;;  %1179 = vmatpush3.bf16.msra.mxu0 %v1291_v60 }
  0x25   :  { %1201 = vmatpush3.bf16.msra.mxu1 %v1292_v1  ;;  %1180 = vmatprep.subr.bf16.mxu0 %v1293_v4 }
  0x26   :  { %1202 = vmatprep.subr.bf16.mxu1 %v1294_v7 }
  0x28   :  { %1181 = vmatpush3.bf16.msra.mxu0 %v1295_v8 }
  0x29   :  { %1203 = vmatpush3.bf16.msra.mxu1 %v1296_v9  ;;  %1182 = vmatprep.subr.bf16.mxu0 %v1297_v10 }
  0x2a   :  { %1204 = vmatprep.subr.bf16.mxu1 %v1298_v11 }
  0x2c   :  { %1183 = vmatpush3.bf16.msra.mxu0 %v1299_v12 }
  0x2d   :  { %1205 = vmatpush3.bf16.msra.mxu1 %v1300_v13  ;;  %1184 = vmatprep.subr.bf16.mxu0 %v1301_v14 }
  0x2e   :  { %1206 = vmatprep.subr.bf16.mxu1 %v1302_v15 }
  0x30   :  { %1185 = vmatpush3.bf16.msra.mxu0 %v1303_v16 }
  0x31   :  { %1207 = vmatpush3.bf16.msra.mxu1 %v1304_v17  ;;  %1186 = vmatprep.subr.bf16.mxu0 %v1305_v18 }
  0x32   :  { %1208 = vmatprep.subr.bf16.mxu1 %v1306_v19 }
  0x34   :  { %1187 = vmatpush3.bf16.msra.mxu0 %v1307_v20 }
  0x35   :  { %1209 = vmatpush3.bf16.msra.mxu1 %v1308_v21  ;;  %1188 = vmatprep.subr.bf16.mxu0 %v1309_v22 }
  0x36   :  { %1210 = vmatprep.subr.bf16.mxu1 %v1310_v23 }
  0x38   :  { %1189 = vmatpush3.bf16.msra.mxu0 %v1311_v24 }
  0x39   :  { %1211 = vmatpush3.bf16.msra.mxu1 %v1312_v25  ;;  %1190 = vmatprep.subr.bf16.mxu0 %v1313_v26 }
  0x3a   :  { %1212 = vmatprep.subr.bf16.mxu1 %v1314_v27 }
  0x3c   :  { %1191 = vmatpush3.bf16.msra.mxu0 %v1315_v28 }
  0x3d   :  { %1213 = vmatpush3.bf16.msra.mxu1 %v1316_v29  ;;  %1192 = vmatprep.subr.bf16.mxu0 %v1317_v30 }
  0x3e   :  { %1214 = vmatprep.subr.bf16.mxu1 %v1318_v31 }
  0x40   :  { %1193 = vmatpush3.bf16.msra.mxu0 %v1319_v32 }
  0x41   :  { %1215 = vmatpush3.bf16.msra.mxu1 %v1320_v33 }
  0x42   :  { %13 = vsyncpa [#allocation4], 0  ;;  %v202_v53 = vcombine.high %v179_v42, %v193_v46  ;;  %v132_v54 = vcombine.high %v114_v47, %v128_v48  ;;  %v201_v55 = vcombine.low %v179_v42, %v193_v46  ;;  %v131_v56 = vcombine.low %v114_v47, %v128_v48  ;;  %v1333_v44 = vld [vmem:[%s1696_s3] sm:$0xff]   ;;  %v1334_v0 = vld [vmem:[%s1696_s3 + $0x8] sm:$0xff]   ;;  %s1364_s30 = smov [#allocation3]  }
  0x43   :  { %v204_v57 = vcombine.high %v186_v50, %v200_v51  ;;  %v203_v58 = vcombine.low %v186_v50, %v200_v51  ;;  %v1362_v63 = vmov 0.0   ;;  %vm1363_vm0 = vmmov 0   ;;  %v1064_v3 = vld [vmem:[%s1695_s2] ss:$0 sm:$0xff]  ;;  %s1056_s8 = sshll.u32 %s1364_s30, 4  ;;  %s1057_s8 = int_to_ptr.vmem [resolvable:$true] %s1056_s8 }
  0x44   :  { %v226_v59 = vpack.c.bf16 %v202_v53, %v130_v49  ;;  %v225_v60 = vpack.c.bf16 %v201_v55, %v129_v52  ;;  %1227 = vmatprep.subr.bf16.mxu0 %v1362_v63  ;;  %1235 = vmatprep.subr.bf16.mxu1 %v1362_v63  ;;  %vm942_vm3 = vcmask 261120   ;;  %v1129_v39 = vld [vmem:[%s1697_s4] ss:$0 sm:$0xff]  ;;  %vm997_vm6 = vcmask 130048   ;;  %s1341_s9 = scalar_lea.vmem %s1057_s8, 32  ;;  %p1342_p1 = scmp.lt.s32.totalorder %s1057_s8, %s1057_s8 }
  0x45   :  { %v228_v61 = vpack.c.bf16 %v204_v57, %v132_v54  ;;  %v227_v62 = vpack.c.bf16 %v203_v58, %v131_v56  ;;  %v993_v53 = vld [vmem:[%s1698_s5] sm:$0x1]  ;;  %v996_v54 = vstv %s1699_s6  ;;  %vm1048_vm7 = vcmask 122880   ;;  %s1337_s5 = scalar_lea.vmem %s1057_s8, 16 }
  0x46   :  { %862 = vmatprep.mubr.bf16.mxu0 %v226_v59  ;;  %p1338_p0 = scmp.ne.s32.totalorder %s1057_s8, %s1337_s5  ;;  %p1343_p2 = scmp.lt.s32.totalorder %s1341_s9, %s1337_s5 }
  0x47   :  { %903 = vmatprep.mubr.bf16.mxu1 %v228_v61  ;;  %863 = vmatmul.mubr.bf16.vlgmr.msra.gmra.mrb[4].mxu0 %v225_v60 }
  0x48   :  { %904 = vmatmul.mubr.bf16.vlgmr.msra.gmra.mrb[4].mxu1 %v227_v62  ;;  %1228 = vmatpush3.bf16.msra.mxu0 %v1333_v44  ;;  %p1344_p3 = por %p1343_p2, %p1342_p1 }
  0x49   :  { %1229 = vmatprep.subr.bf16.mxu0 %v1362_v63  ;;  %1231 = vmatprep.mubr.msk.bf16.mxu0 %vm1363_vm0, %v1362_v63 }
  0x4a   :  { %1237 = vmatprep.mubr.msk.bf16.mxu1 %vm1363_vm0, %v1362_v63  ;;  %p1345_p4 = pnand %p1344_p3, %p1338_p0 }
  0x4c   :  { %1230 = vmatpush3.bf16.msra.mxu0 %v1334_v0 }
  0xf6   :  { %v1150_v1 = vpop.f32.mrb[0].mxu0 }
  0xf7   :  { %v1172_v2 = vpop.f32.mrb[0].mxu1  ;;  %v1151_v4 = vpop.f32.mrb[1].mxu0 }
  0xf8   :  { %v1152_v5 = vadd.f32 %v1151_v4, %v1150_v1  ;;  %v1173_v6 = vpop.f32.mrb[1].mxu1  ;;  %v1153_v7 = vpop.f32.mrb[2].mxu0 }
  0xf9   :  { %v1174_v8 = vadd.f32 %v1173_v6, %v1172_v2  ;;  %v1175_v9 = vpop.f32.mrb[2].mxu1  ;;  %v1154_v10 = vpop.f32.mrb[3].mxu0 }
  0xfa   :  { %v783_v11 = vadd.f32 %v1152_v5, %v1064_v3  ;;  %v1155_v12 = vadd.f32 %v1154_v10, %v1153_v7  ;;  %v1176_v13 = vpop.f32.mrb[3].mxu1 }
  0xfb   :  { %v1177_v14 = vadd.f32 %v1176_v13, %v1175_v9 }
  0xfc   :  { %v824_v15 = vadd.f32 %v1174_v8, %v783_v11  ;;  %v786_v16 = vadd.f32 %v1155_v12, %v1064_v3 }
  0xfe   :  { %v827_v17 = vadd.f32 %v1177_v14, %v786_v16 }
 0x11a   :  { %v1194_v18 = vpop.f32.mrb[4].mxu0 }
 0x11b   :  { %v1216_v19 = vpop.f32.mrb[4].mxu1  ;;  %v1195_v20 = vpop.f32.mrb[5].mxu0 }
 0x11c   :  { %v1196_v21 = vadd.f32 %v1195_v20, %v1194_v18  ;;  %v1217_v22 = vpop.f32.mrb[5].mxu1  ;;  %v1197_v23 = vpop.f32.mrb[6].mxu0 }
 0x11d   :  { %v1218_v24 = vadd.f32 %v1217_v22, %v1216_v19  ;;  %v1219_v25 = vpop.f32.mrb[6].mxu1  ;;  %v1198_v26 = vpop.f32.mrb[7].mxu0 }
 0x11e   :  { %v865_v27 = vadd.f32 %v1196_v21, %v824_v15  ;;  %v1199_v28 = vadd.f32 %v1198_v26, %v1197_v23  ;;  %v1220_v29 = vpop.f32.mrb[7].mxu1 }
 0x11f   :  { %v1221_v30 = vadd.f32 %v1220_v29, %v1219_v25 }
 0x120   :  { %v906_v31 = vadd.f32 %v1218_v24, %v865_v27  ;;  %v868_v32 = vadd.f32 %v1199_v28, %v827_v17 }
 0x122   :  { %v914_v33 = vmul.f32 0.2, %v906_v31  ;;  %v909_v34 = vadd.f32 %v1221_v30, %v868_v32  ;;  %vm912_vm1 = vcmp.ge.f32.partialorder %v906_v31, 0.0 }
 0x124   :  { %vm913_vm2 = vcmp.ge.f32.partialorder %v909_v34, 0.0  ;;  %v915_v35 = vmul.f32 0.2, %v909_v34  ;;  %v916_v36 = vsel %vm912_vm1, %v906_v31, %v914_v33 }
 0x126   :  { %v917_v37 = vsel %vm913_vm2, %v909_v34, %v915_v35 }
 0x127   :  { %v918_v38 = vpack.c.bf16 %v917_v37, %v916_v36 }
 0x129   :  { %1232 = vmatmul.mubr.msk.bf16.vlgmr.msra.gmra.mrb[8].mxu0 %vm942_vm3, %v918_v38 }
 0x1fc   :  { %v980_v40 = vpop.f32.mrb[8].mxu0 }
 0x1fd   :  { %v981_v41 = vadd.f32 %v1129_v39, %v980_v40  ;;  %v1233_v42 = vpop.f32.mrb[9].mxu0 }
 0x1fe   :  { %v983_v43 = vpop.f32.mrb[10].mxu0 }
 0x1ff   :  { %v989_v45 = vmul.f32 0.2, %v981_v41  ;;  %v984_v46 = vadd.f32 %v1129_v39, %v983_v43  ;;  %v1234_v47 = vpop.f32.mrb[11].mxu0  ;;  %vm987_vm4 = vcmp.ge.f32.partialorder %v981_v41, 0.0 }
 0x201   :  { %vm988_vm5 = vcmp.ge.f32.partialorder %v984_v46, 0.0  ;;  %v990_v48 = vmul.f32 0.2, %v984_v46  ;;  %v991_v49 = vsel %vm987_vm4, %v981_v41, %v989_v45 }
 0x203   :  { %v992_v50 = vsel %vm988_vm5, %v984_v46, %v990_v48 }
 0x204   :  { %v994_v51 = vpack.c.bf16 %v992_v50, %v991_v49 }
 0x206   :  { %v1002_v52 = vsel %vm997_vm6, %v994_v51, 0 }
 0x207   :  { %1236 = vmatpush3.bf16.xpose.msra.mxu1 %v1002_v52 }
 0x20e   :  { %1238 = vmatmul.mubr.msk.bf16.vlgmr.msra.gmra.mrb[8].mxu1 %vm997_vm6, %v993_v53 }
 0x2e1   :  { %v1038_v55 = vpop.f32.mrb[8].mxu1 }
 0x2e2   :  { %v1039_v56 = vadd.f32 %v1038_v55, %v996_v54  ;;  %v1239_v57 = vpop.f32.mrb[9].mxu1 }
 0x2e3   :  { %v1041_v58 = vpop.f32.mrb[10].mxu1 }
 0x2e4   :  { %v1044_v59 = vmul.f32 0.5, %v1039_v56  ;;  %v1240_v60 = vpop.f32.mrb[11].mxu1 }
 0x2e6   :  { %1335 = vtanh.f32 %v1044_v59 }
 0x2f0   :  { %v1336_v61 = vpop.eup %1335 }
 0x2f1   :  { %v1046_v62 = vadd.f32 1.0, %v1336_v61 }
 0x2f3   :  { %v1047_v44 = vmul.f32 0.5, %v1046_v62 }
 0x2f5   :  { %1049 = vst.msk [vmem:[#allocation3] sm:$0x1] %vm1048_vm7, %v1047_v44 }
 0x2f6   :  { %1348 = shalt.err (!%p1345_p4)
}
 0x2f7   :  { %s1349_s11 = scalar_lea.hbm %s1700_s7, 16 }
 0x2f8   :  { %p1350_p5 = scmp.ne.s32.totalorder %s1700_s7, %s1349_s11  ;;  %p1353_p6 = scmp.lt.u32.totalorder %s1349_s11, %s1700_s7 }
 0x2fa   :  { %p1355_p7 = pnand %p1353_p6, %p1350_p5 }
 0x2fc   :  { %1358 = shalt.err (!%p1355_p7)
}
 0x2fd   :  { %1059 = dma.vmem_to_hbm [thread:$0]  %s1057_s8, 16, %s1700_s7, [#allocation4]  }
 0x2fe   :  { %1359 = dma.done.wait [#allocation4], 16  }
 0x2ff   :  { %1360 = vsyncadd [#allocation4], 4294967280 }
 0x300   :  { %1063 = vsyncpa [#allocation4], 1 }

</bundles_post_ra>
